<compile_context>
chip_gen: v7x
topology: tpu7x:2x2x1
jax: 0.10.0
libtpu: 0.0.40
codegen_flags: <defaults>
</compile_context>

<pallas_src>
import functools

import jax
import jax.numpy as jnp
from jax import lax
from jax.experimental import pallas as pl
from jax.experimental.pallas import tpu as pltpu


_TAPS = tuple((dy, dx) for dy in (-1, 0, 1) for dx in (-1, 0, 1))


@functools.lru_cache(maxsize=None)
def _roll_matches_np_roll():
    """One-time probe: does pltpu.roll follow the np.roll convention
    (out[i] == x[(i - shift) % n])?  Makes the main kernel convention-proof."""
    def probe(x_ref, o_ref):
        o_ref[...] = pltpu.roll(x_ref[...], 1, axis=1)

    x = jnp.tile(jnp.arange(128, dtype=jnp.float32)[None, :], (8, 1))
    out = pl.pallas_call(
        probe, out_shape=jax.ShapeDtypeStruct((8, 128), jnp.float32))(x)
    return bool(jnp.array_equal(out, jnp.roll(x, 1, axis=1)))


def _make_basic_conv_kernel(H, W, C, B, roll_like_np):
    HW = H * W

    def tap_shift(s):
        # We need rolled[p] == src[(p + s) % HW].
        return ((-s) % HW) if roll_like_np else (s % HW)

    def kernel(x_ref, w1_ref, b1_ref, w2_ref, b2_ref, out_ref):
        # x_ref/out_ref: (B, C, HW)   w*_ref: (9, C, C)  (tap-major: t = (dy+1)*3+(dx+1))
        # b*_ref: (C, 1)

        # ---- validity masks built in-kernel (cheap VPU iota work, hoisted) ----
        lane = lax.broadcasted_iota(jnp.int32, (1, HW), 1)
        col = lane % W
        row = lane // W
        col_ok = {-1: col > 0, 0: None, 1: col < (W - 1)}
        row_ok = {-1: row > 0, 0: None, 1: row < (H - 1)}

        def make_mask(dy, dx):
            m = None
            for cond in (row_ok[dy], col_ok[dx]):
                if cond is None:
                    continue
                m = cond if m is None else jnp.logical_and(m, cond)
            if m is None:
                return None
            # Pre-broadcast once so the per-tap multiply is a plain VPU op.
            return jnp.broadcast_to(m.astype(jnp.float32), (C, HW))

        masks = {td: make_mask(*td) for td in _TAPS}

        def conv3x3_relu(src, w_ref, b_ref):
            # SAME-padded 3x3 conv + bias + ReLU on one (C, HW) image:
            # 9 lane-rolled taps, masked at the image border, 9 accumulated dots.
            acc = None
            for t, (dy, dx) in enumerate(_TAPS):
                s = dy * W + dx                       # tap reads src[p + s]
                sh = src if s == 0 else pltpu.roll(src, tap_shift(s), axis=1)
                m = masks[(dy, dx)]
                if m is not None:
                    sh = sh * m                       # zero out-of-image samples
                contrib = jnp.dot(w_ref[t], sh,       # (C,C) @ (C,HW) on the MXU
                                  preferred_element_type=jnp.float32)
                acc = contrib if acc is None else acc + contrib
            return jnp.maximum(acc + b_ref[...], 0.0)

        # Static unroll over the images of this block (B is kept small).
        for b in range(B):
            x = x_ref[b]                              # (C, HW), stays on-chip
            h1 = conv3x3_relu(x, w1_ref, b1_ref)
            h2 = conv3x3_relu(h1, w2_ref, b2_ref)
            out_ref[b] = (x + h2).astype(out_ref.dtype)

    return kernel


def _choose_images_per_block(n, c, hw, *, max_images=8, vmem_budget_bytes=6 << 20):
    """Images per grid step: amortize the ~0.35us/step overhead, stay well under
    VMEM, and keep >= 2 grid steps so both v7x TensorCores get work."""
    per_image = 20 * c * hw * 4                      # rough f32 working set / image
    b = max(1, min(max_images, vmem_budget_bytes // max(per_image, 1)))
    if n >= 2:
        b = min(b, n // 2)
    b = max(1, min(b, n))
    while n % b:                                     # exact grid (no remainder step)
        b -= 1
    return b


def basic_conv_forward(x_nchw, w1_oihw, b1, w2_oihw, b2, *, images_per_block=None):
    """basicConv forward: x + relu(conv2(relu(conv1(x)))).

    x_nchw : (N, C, H, W) float32 (PyTorch layout, no NHWC transposes).
    w*_oihw: (C, C, 3, 3) float32 (PyTorch Conv2d layout).   b*: (C,) float32.
    """
    N, C, H, W = x_nchw.shape
    HW = H * W

    x_flat = x_nchw.reshape(N, C, HW).astype(jnp.float32)   # layout-preserving

    # (Cout, Cin, 3, 3) -> (3, 3, Cout, Cin) -> (9, Cout, Cin).
    w1_taps = jnp.transpose(w1_oihw, (2, 3, 0, 1)).reshape(9, C, C).astype(jnp.float32)
    w2_taps = jnp.transpose(w2_oihw, (2, 3, 0, 1)).reshape(9, C, C).astype(jnp.float32)
    b1_col = b1.reshape(C, 1).astype(jnp.float32)
    b2_col = b2.reshape(C, 1).astype(jnp.float32)

    B = images_per_block or _choose_images_per_block(N, C, HW)
    assert N % B == 0, (N, B)
    grid = (N // B,)

    # Per-step VMEM estimate (double-buffered x/out blocks + resident weights +
    # working set) with headroom; clamp under v7x's 64 MiB physical VMEM.
    block_bytes = B * C * HW * 4
    weight_bytes = 2 * (9 * C * C + C) * 4
    work_bytes = (9 + 20 * B) * C * HW * 4
    vmem_estimate = 4 * block_bytes + 2 * weight_bytes + work_bytes
    vmem_limit = int(min(32 * 1024 * 1024, max(16 * 1024 * 1024, 2 * vmem_estimate)))

    kernel = _make_basic_conv_kernel(H, W, C, B, _roll_matches_np_roll())
    out_flat = pl.pallas_call(
        kernel,
        out_shape=jax.ShapeDtypeStruct((N, C, HW), jnp.float32),
        grid=grid,
        in_specs=[
            pl.BlockSpec((B, C, HW), lambda i: (i, 0, 0)),
            pl.BlockSpec((9, C, C), lambda i: (0, 0, 0)),
            pl.BlockSpec((C, 1), lambda i: (0, 0)),
            pl.BlockSpec((9, C, C), lambda i: (0, 0, 0)),
            pl.BlockSpec((C, 1), lambda i: (0, 0)),
        ],
        out_specs=pl.BlockSpec((B, C, HW), lambda i: (i, 0, 0)),
        compiler_params=pltpu.CompilerParams(
            dimension_semantics=("parallel",),
            vmem_limit_bytes=vmem_limit,
        ),
    )(x_flat, w1_taps, b1_col, w2_taps, b2_col)

    # TODO(synk): for large C*H*W add spatial row tiling with a 2-row halo
    #   (overlapping index_map, second "parallel" grid axis) and feed the MXU
    #   bf16 inputs with f32 accumulation on v6e/v7x to halve HBM/VMEM traffic.
    return out_flat.reshape(N, C, H, W)


def _reference_forward(x_nchw, w1_oihw, b1, w2_oihw, b2):
    dn = ("NCHW", "OIHW", "NCHW")
    c1 = lax.conv_general_dilated(x_nchw, w1_oihw, (1, 1), "SAME",
                                  dimension_numbers=dn)
    h1 = jax.nn.relu(c1 + b1.reshape(1, -1, 1, 1))
    c2 = lax.conv_general_dilated(h1, w2_oihw, (1, 1), "SAME",
                                  dimension_numbers=dn)
    h2 = jax.nn.relu(c2 + b2.reshape(1, -1, 1, 1))
    return x_nchw + h2


if __name__ == "__main__":
    key = jax.random.PRNGKey(0)
    k_x, k_w1, k_b1, k_w2, k_b2 = jax.random.split(key, 5)

    N, C, H, W = 2, 4, 16, 16
    x = jax.random.normal(k_x, (N, C, H, W), dtype=jnp.float32)

    # PyTorch-style init: weights (Cout, Cin, 3, 3), biases (Cout,)
    fan_in = C * 3 * 3
    bound = 1.0 / (fan_in ** 0.5)
    w1 = jax.random.uniform(k_w1, (C, C, 3, 3), jnp.float32, -bound, bound)
    b1 = jax.random.uniform(k_b1, (C,), jnp.float32, -bound, bound)
    w2 = jax.random.uniform(k_w2, (C, C, 3, 3), jnp.float32, -bound, bound)
    b2 = jax.random.uniform(k_b2, (C,), jnp.float32, -bound, bound)

    out = jax.block_until_ready(basic_conv_forward(x, w1, b1, w2, b2))
    ref = jax.block_until_ready(_reference_forward(x, w1, b1, w2, b2))

    assert out.shape == (N, C, H, W)
    assert jnp.allclose(out, ref, atol=2e-3, rtol=2e-3), "mismatch vs reference"
    print("KERNEL_OK")
</pallas_src>

<mosaic_0001>
module attributes {stable_mosaic.version = 11 : i64} {
  func.func @probe(%arg0: memref<8x128xf32, #tpu.memory_space<vmem>>, %arg1: memref<8x128xf32, #tpu.memory_space<vmem>>) attributes {dimension_semantics = [], scalar_prefetch = 0 : i64, scratch_operands = 0 : i64, tpu.core_type = #tpu.core_type<tc>} {
    %c0 = arith.constant 0 : index
    %c0_0 = arith.constant 0 : index
    %0 = vector.load %arg0[%c0, %c0_0] : memref<8x128xf32, #tpu.memory_space<vmem>>, vector<8x128xf32>
    %c1_i32 = arith.constant 1 : i32
    %1 = tpu.dynamic_rotate %0 by %c1_i32 dim 1 : vector<8x128xf32>, i32 -> vector<8x128xf32>
    %c0_1 = arith.constant 0 : index
    %c0_2 = arith.constant 0 : index
    %2 = vector.load %arg1[%c0_1, %c0_2] : memref<8x128xf32, #tpu.memory_space<vmem>>, vector<8x128xf32>
    tpu.vector_store %arg1[%c0_1, %c0_2], %1 {strides = array<i32>} : memref<8x128xf32, #tpu.memory_space<vmem>>, vector<8x128xf32>,
    return
  }
}

</mosaic_0001>

<bundles_post_ra>
// kernel: tpu_custom_call.1
= control target key start
LH: loop header
LB: loop body
LE: loop exit
PB: predicated region body
PF: predicated region fallthrough
CT: control target
= control target key end

     0   :  { %6 = vsyncpa [#allocation3], 0  ;;  %s128_s0 = inlined_call_operand.hbm [shape: f32[8,128], index: 0, kind: input, shape index: {}]   ;;  %s129_s1 = inlined_call_operand.hbm [shape: f32[8,128], index: 1, kind: output, shape index: {}]  }
   0x1   :  { %7 = vsyncpa [#allocation4], 0  ;;  %s91_s6 = smov [#allocation2]   ;;  %s43_s10 = scalar_lea.hbm %s128_s0, 128 }
   0x2   :  { %s14_s7 = sshll.u32 %s91_s6, 4  ;;  %p44_p0 = scmp.ne.s32.totalorder %s128_s0, %s43_s10  ;;  %s15_s7 = int_to_ptr.vmem [resolvable:$true] %s14_s7 }
   0x3   :  { %p47_p1 = scmp.lt.u32.totalorder %s43_s10, %s128_s0 }
   0x5   :  { %p49_p2 = pnand %p47_p1, %p44_p0 }
   0x7   :  { %52 = shalt.err (!%p49_p2)
}
   0x8   :  { %s53_s15 = scalar_lea.vmem %s15_s7, 128  ;;  %p58_p4 = scmp.lt.s32.totalorder %s15_s7, %s15_s7 }
   0x9   :  { %p54_p3 = scmp.ne.s32.totalorder %s15_s7, %s53_s15  ;;  %p59_p5 = scmp.lt.s32.totalorder %s53_s15, %s53_s15 }
   0xb   :  { %p60_p6 = por %p59_p5, %p58_p4 }
   0xd   :  { %p61_p7 = pnand %p60_p6, %p54_p3 }
   0xf   :  { %64 = shalt.err (!%p61_p7)
}
  0x10   :  { %17 = dma.hbm_to_vmem [thread:$0]  %s128_s0, 128, %s15_s7, [#allocation3]  }
  0x11   :  { %87 = dma.done.wait [#allocation3], 128  }
  0x12   :  { %88 = vsyncadd [#allocation3], 4294967168  ;;  %v21_v0 = vld [vmem:[#allocation2] sm:$0xff]  ;;  %s92_s18 = smov 1   ;;  %s93_s19 = smov [#allocation5]  }
  0x13   :  { %22 = vrot.lane.b32.xlu0 %v21_v0, %s92_s18  ;;  %s31_s20 = sshll.u32 %s93_s19, 4  ;;  %s32_s20 = int_to_ptr.vmem [resolvable:$true] %s31_s20 }
  0x14   :  { %s65_s21 = scalar_lea.vmem %s32_s20, 128  ;;  %p70_p9 = scmp.lt.s32.totalorder %s32_s20, %s32_s20 }
  0x15   :  { %p66_p8 = scmp.ne.s32.totalorder %s32_s20, %s65_s21  ;;  %p71_p10 = scmp.lt.s32.totalorder %s65_s21, %s65_s21 }
  0x17   :  { %p72_p11 = por %p71_p10, %p70_p9 }
  0x19   :  { %p73_p12 = pnand %p72_p11, %p66_p8 }
  0x85   :  { %v23_v1 = vpop.permute.xlu0 %22 }
  0x86   :  { %24 = vst [vmem:[#allocation5] sm:$0xff] %v23_v1 }
  0x87   :  { %76 = shalt.err (!%p73_p12)
}
  0x88   :  { %s77_s0 = scalar_lea.hbm %s129_s1, 128 }
  0x89   :  { %p78_p13 = scmp.ne.s32.totalorder %s129_s1, %s77_s0  ;;  %p81_p0 = scmp.lt.u32.totalorder %s77_s0, %s129_s1 }
  0x8b   :  { %p83_p1 = pnand %p81_p0, %p78_p13 }
  0x8d   :  { %86 = shalt.err (!%p83_p1)
}
  0x8e   :  { %34 = dma.vmem_to_hbm [thread:$0]  %s32_s20, 128, %s129_s1, [#allocation4]  }
  0x8f   :  { %89 = dma.done.wait [#allocation4], 128  }
  0x90   :  { %90 = vsyncadd [#allocation4], 4294967168 }
  0x91   :  { %38 = vsyncpa [#allocation3], 1 }
  0x92   :  { %39 = vsyncpa [#allocation4], 1 }

</bundles_post_ra>
